<compile_context>
chip_gen: v6e
topology: v6e:2x2x1
jax: 0.10.0
libtpu: 0.0.40
codegen_flags: <defaults>
</compile_context>

<pallas_src>
import math

import jax
import jax.numpy as jnp
from jax.experimental import pallas as pl
from jax.experimental.pallas import tpu as pltpu


# ---------------------------------------------------------------------------
# helpers
# ---------------------------------------------------------------------------
def _round_up(n, m):
    return ((n + m - 1) // m) * m


def _device_kind():
    try:
        return jax.devices()[0].device_kind.lower()
    except Exception:
        return ""


def _default_pack():
    """Row-packing factor: 2 on the 128-wide v5 MXU, 4 on 256-wide v6e/v7x."""
    return 2 if "v5" in _device_kind() else 4


def _num_tensorcores():
    """TensorCores the 'parallel' grid axis can shard across (v7x megacore)."""
    return 2 if "v7" in _device_kind() else 1


def _block_diag(w, p):
    """blockdiag(w, w, ..., w) with p copies along the diagonal."""
    if p == 1:
        return w
    fin, fout = w.shape
    out = jnp.zeros((p * fin, p * fout), w.dtype)
    for i in range(p):
        out = out.at[i * fin:(i + 1) * fin, i * fout:(i + 1) * fout].set(w)
    return out


def _pick_row_tile(m_rows, tm_max, quantum, num_tc):
    """Row tile for the packed (m_rows, P*D_in) view.

    Single-TC parts get one big (full-dim) tile whenever it fits: the grid is
    a serial loop there, so extra steps only add ~0.35us each.  On v7x we use
    an even number of >= 2 steps so the parallel axis balances across both
    TensorCores.  Tiles are rounded to `quantum` (16: bf16 sublane packing);
    a full-dim tile is always layout-legal regardless of the multiple.
    """
    if num_tc >= 2 and m_rows > 2 * quantum:
        grid = max(2, pl.cdiv(m_rows, tm_max))
        if grid % 2:
            grid += 1
        return _round_up(pl.cdiv(m_rows, grid), quantum)
    if m_rows <= tm_max:
        return m_rows                                   # one full-dim tile
    grid = pl.cdiv(m_rows, tm_max)
    return _round_up(pl.cdiv(m_rows, grid), quantum)


# ---------------------------------------------------------------------------
# kernel
# ---------------------------------------------------------------------------
def _mlp_kernel(x_ref, w1_ref, b1_ref, w2_ref, b2_ref, w3_ref, b3_ref, o_ref):
    # x_ref : (tm, P*D_in) tile in the caller's dtype (cast in-kernel).
    # w1_ref: (P*D_in, P*H) block-diag; w2_ref: (P*H, P*H); w3_ref: (P*H, P).
    # b1/b2 : (1, P*H) f32; b3: (1,) f32 scalar in SMEM.  o_ref: (tm, P).
    x = x_ref[...].astype(w1_ref.dtype)

    # Layer 1: MXU matmul (f32 accumulation) + bias + ReLU.  Dropout = identity (eval).
    h1 = jnp.dot(x, w1_ref[...], preferred_element_type=jnp.float32) + b1_ref[...]
    h1 = jnp.maximum(h1, 0.0)

    # Layer 2.
    h2 = jnp.dot(h1.astype(w2_ref.dtype), w2_ref[...],
                 preferred_element_type=jnp.float32) + b2_ref[...]
    h2 = jnp.maximum(h2, 0.0)

    # Layer 3 (per-row H -> 1): the block-diagonal (P*H, P) matmul is the
    # per-H-lane segmented reduce, producing one lane per packed row.
    out = jnp.dot(h2.astype(w3_ref.dtype), w3_ref[...],
                  preferred_element_type=jnp.float32) + b3_ref[0]
    o_ref[...] = out.astype(o_ref.dtype)


# ---------------------------------------------------------------------------
# wrapper
# ---------------------------------------------------------------------------
def time_linear_forward(x, params, *, tm_max=2048, compute_dtype=jnp.bfloat16,
                        pack=None):
    """TimeLinear forward pass (eval mode).

    x: (B, S, D_in); params: w1 (D_in,H), b1 (1,H), w2 (H,H), b2 (1,H),
    w3 (H,1), b3 (1,1).  Returns (B, S, 1) in x.dtype.

    NOTE: compute_dtype=bf16 (default) feeds the MXU in bf16 with f32
    accumulation; pass compute_dtype=jnp.float32 for full-precision matmuls.
    """
    B, S, D_in = x.shape
    H = params["w1"].shape[1]
    out_dtype = x.dtype
    M = B * S

    P = int(pack) if pack is not None else _default_pack()

    # Pad to a multiple of P only if needed (usually M % P == 0 and the packed
    # reshape below is a free metadata-only reshape — no extra HBM pass).
    M_pad = _round_up(M, P)
    x2d = x.reshape(M, D_in)
    if M_pad != M:
        x2d = jnp.pad(x2d, ((0, M_pad - M), (0, 0)))
    Mp = M_pad // P
    xp = x2d.reshape(Mp, P * D_in)          # lane-pack P consecutive rows

    tm = _pick_row_tile(Mp, tm_max, 16, _num_tensorcores())
    grid = pl.cdiv(Mp, tm)                  # ragged last tile is OK

    # Packed weights (tiny arrays; cast/construction cost is negligible).
    wd = compute_dtype
    w1p = _block_diag(params["w1"].astype(wd), P)                   # (P*D_in, P*H)
    w2p = _block_diag(params["w2"].astype(wd), P)                   # (P*H, P*H)
    w3p = _block_diag(params["w3"].astype(wd), P)                   # (P*H, P)
    b1p = jnp.tile(params["b1"].reshape(1, H).astype(jnp.float32), (1, P))
    b2p = jnp.tile(params["b2"].reshape(1, H).astype(jnp.float32), (1, P))
    b3 = params["b3"].reshape(1).astype(jnp.float32)                # SMEM scalar

    x_bytes = int(jnp.dtype(x.dtype).itemsize)
    w_bytes = int(jnp.dtype(wd).itemsize)
    out_bytes = int(jnp.dtype(out_dtype).itemsize)
    flops = 2 * M_pad * (D_in * H + H * H + H)
    bytes_accessed = (M_pad * D_in * x_bytes
                      + M_pad * out_bytes
                      + (P * D_in * P * H + P * H * P * H + P * H * P) * w_bytes
                      + (2 * P * H + 1) * 4)

    outp = pl.pallas_call(
        _mlp_kernel,
        out_shape=jax.ShapeDtypeStruct((Mp, P), out_dtype),
        grid_spec=pltpu.PrefetchScalarGridSpec(
            num_scalar_prefetch=0,
            grid=(grid,),
            in_specs=[
                pl.BlockSpec((tm, P * D_in), lambda i: (i, 0)),        # x tile
                pl.BlockSpec((P * D_in, P * H), lambda i: (0, 0)),     # W1'
                pl.BlockSpec((1, P * H), lambda i: (0, 0)),            # b1'
                pl.BlockSpec((P * H, P * H), lambda i: (0, 0)),        # W2'
                pl.BlockSpec((1, P * H), lambda i: (0, 0)),            # b2'
                pl.BlockSpec((P * H, P), lambda i: (0, 0)),            # W3'
                pl.BlockSpec(memory_space=pltpu.MemorySpace.SMEM),     # b3
            ],
            out_specs=pl.BlockSpec((tm, P), lambda i: (i, 0)),
        ),
        compiler_params=pltpu.CompilerParams(
            dimension_semantics=("parallel",),
        ),
        cost_estimate=pl.CostEstimate(
            flops=flops, transcendentals=0, bytes_accessed=bytes_accessed),
    )(xp, w1p, b1p, w2p, b2p, w3p, b3)

    return outp.reshape(M_pad)[:M].reshape(B, S, 1)


# ---------------------------------------------------------------------------
# params / reference
# ---------------------------------------------------------------------------
def init_params(key, input_size, hidden_size=64, dtype=jnp.float32):
    """Deterministic init mirroring torch.nn.Linear default (+-1/sqrt(fan_in)).

    Weights are stored as (in_features, out_features).
    """
    ks = jax.random.split(key, 6)

    def linear(kw, kb, fan_in, fan_out):
        bound = 1.0 / math.sqrt(fan_in)
        w = jax.random.uniform(kw, (fan_in, fan_out), dtype, -bound, bound)
        b = jax.random.uniform(kb, (1, fan_out), dtype, -bound, bound)
        return w, b

    w1, b1 = linear(ks[0], ks[1], input_size, hidden_size)
    w2, b2 = linear(ks[2], ks[3], hidden_size, hidden_size)
    w3, b3 = linear(ks[4], ks[5], hidden_size, 1)
    return {"w1": w1, "b1": b1, "w2": w2, "b2": b2, "w3": w3, "b3": b3}


def reference_forward(x, params, compute_dtype=jnp.float32):
    """Pure-JAX reference of the PyTorch forward (eval mode), mirroring the
    kernel's cast-then-accumulate-in-f32 structure."""
    cd = compute_dtype
    h = jnp.dot(x.astype(cd), params["w1"].astype(cd),
                preferred_element_type=jnp.float32) + params["b1"]
    h = jnp.maximum(h, 0.0)
    h = jnp.dot(h.astype(cd), params["w2"].astype(cd),
                preferred_element_type=jnp.float32) + params["b2"]
    h = jnp.maximum(h, 0.0)
    out = jnp.dot(h.astype(cd), params["w3"].astype(cd),
                  preferred_element_type=jnp.float32) + params["b3"]
    return out


# ---------------------------------------------------------------------------
# demo / self-test
# ---------------------------------------------------------------------------
if __name__ == "__main__":
    B, S, D_in, H = 2, 8, 32, 64

    key = jax.random.PRNGKey(0)
    k_x, k_p, k_x2 = jax.random.split(key, 3)
    params = init_params(k_p, D_in, H)

    # --- small module-sized example, default (bf16 MXU inputs) path ---
    x = jax.random.normal(k_x, (B, S, D_in), dtype=jnp.float32)
    out = jax.block_until_ready(time_linear_forward(x, params))
    assert out.shape == (B, S, 1), out.shape
    ref_bf16 = reference_forward(x, params, compute_dtype=jnp.bfloat16)
    ref_f32 = reference_forward(x, params, compute_dtype=jnp.float32)
    assert jnp.allclose(out, ref_bf16, atol=2e-3, rtol=2e-3), "mismatch vs bf16 reference"
    assert jnp.allclose(out, ref_f32, atol=5e-2, rtol=5e-2), "mismatch vs f32 reference"

    # --- full-precision path ---
    out_f32 = jax.block_until_ready(
        time_linear_forward(x, params, compute_dtype=jnp.float32))
    assert jnp.allclose(out_f32, ref_f32, atol=5e-3, rtol=5e-3), "f32 path mismatch"

    # --- larger shape NOT divisible by the packing factor: exercises the
    #     <=P-1-row pad, the packed reshape and (on v7x) the even/ragged grid.
    x2 = jax.random.normal(k_x2, (2, 301, D_in), dtype=jnp.float32)
    out2 = jax.block_until_ready(time_linear_forward(x2, params))
    ref2 = reference_forward(x2, params, compute_dtype=jnp.bfloat16)
    assert out2.shape == (2, 301, 1), out2.shape
    assert jnp.allclose(out2, ref2, atol=2e-3, rtol=2e-3), "packed/padded-grid mismatch"

    print("KERNEL_OK")
</pallas_src>

<mosaic_0001>
module attributes {stable_mosaic.version = 11 : i64} {
  func.func @_mlp_kernel(%arg0: i32, %arg1: memref<4x128xf32, #tpu.memory_space<vmem>>, %arg2: memref<128x256xbf16, #tpu.memory_space<vmem>>, %arg3: memref<1x256xf32, #tpu.memory_space<vmem>>, %arg4: memref<256x256xbf16, #tpu.memory_space<vmem>>, %arg5: memref<1x256xf32, #tpu.memory_space<vmem>>, %arg6: memref<256x4xbf16, #tpu.memory_space<vmem>>, %arg7: memref<1xf32, #tpu.memory_space<smem>>, %arg8: memref<4x4xf32, #tpu.memory_space<vmem>>) attributes {dimension_semantics = [#tpu.dimension_semantics<parallel>], iteration_bounds = array<i64: 1>, scalar_prefetch = 0 : i64, scratch_operands = 0 : i64, tpu.core_type = #tpu.core_type<tc>, window_params = [{transform_indices = @transform_0, window_bounds = array<i64: 4, 128>}, {pipeline_mode = #tpu.pipeline_mode<synchronous>, transform_indices = @transform_1, window_bounds = array<i64: 128, 256>}, {pipeline_mode = #tpu.pipeline_mode<synchronous>, transform_indices = @transform_2, window_bounds = array<i64: 1, 256>}, {pipeline_mode = #tpu.pipeline_mode<synchronous>, transform_indices = @transform_3, window_bounds = array<i64: 256, 256>}, {pipeline_mode = #tpu.pipeline_mode<synchronous>, transform_indices = @transform_4, window_bounds = array<i64: 1, 256>}, {pipeline_mode = #tpu.pipeline_mode<synchronous>, transform_indices = @transform_5, window_bounds = array<i64: 256, 4>}, {transform_indices = @transform_6, window_bounds = array<i64: 1>}, {transform_indices = @transform_7, window_bounds = array<i64: 4, 4>}]} {
    %c0 = arith.constant 0 : index
    %c0_0 = arith.constant 0 : index
    %0 = vector.load %arg1[%c0, %c0_0] : memref<4x128xf32, #tpu.memory_space<vmem>>, vector<4x128xf32>
    %1 = arith.truncf %0 : vector<4x128xf32> to vector<4x128xbf16>
    %c0_1 = arith.constant 0 : index
    %c0_2 = arith.constant 0 : index
    %2 = vector.load %arg2[%c0_1, %c0_2] : memref<128x256xbf16, #tpu.memory_space<vmem>>, vector<128x256xbf16>
    %cst = arith.constant dense<0.000000e+00> : vector<4x256xf32>
    %3 = tpu.matmul %1, %2, %cst {dimension_numbers = #tpu.dot_dimension_numbers<[1], [0], [0], [1], [0, 0, 1, 1], [], []>} : vector<4x128xbf16>, vector<128x256xbf16>, vector<4x256xf32> -> vector<4x256xf32>
    %c0_3 = arith.constant 0 : index
    %c0_4 = arith.constant 0 : index
    %4 = vector.load %arg3[%c0_3, %c0_4] : memref<1x256xf32, #tpu.memory_space<vmem>>, vector<1x256xf32>
    %5 = vector.broadcast %4 : vector<1x256xf32> to vector<4x256xf32>
    %6 = arith.addf %3, %5 : vector<4x256xf32>
    %cst_5 = arith.constant 0.000000e+00 : f32
    %7 = vector.broadcast %cst_5 : f32 to vector<4x256xf32>
    %8 = arith.maximumf %6, %7 : vector<4x256xf32>
    %9 = arith.truncf %8 : vector<4x256xf32> to vector<4x256xbf16>
    %c0_6 = arith.constant 0 : index
    %c0_7 = arith.constant 0 : index
    %10 = vector.load %arg4[%c0_6, %c0_7] : memref<256x256xbf16, #tpu.memory_space<vmem>>, vector<256x256xbf16>
    %cst_8 = arith.constant dense<0.000000e+00> : vector<4x256xf32>
    %11 = tpu.matmul %9, %10, %cst_8 {dimension_numbers = #tpu.dot_dimension_numbers<[1], [0], [0], [1], [0, 0, 1, 1], [], []>} : vector<4x256xbf16>, vector<256x256xbf16>, vector<4x256xf32> -> vector<4x256xf32>
    %c0_9 = arith.constant 0 : index
    %c0_10 = arith.constant 0 : index
    %12 = vector.load %arg5[%c0_9, %c0_10] : memref<1x256xf32, #tpu.memory_space<vmem>>, vector<1x256xf32>
    %13 = vector.broadcast %12 : vector<1x256xf32> to vector<4x256xf32>
    %14 = arith.addf %11, %13 : vector<4x256xf32>
    %cst_11 = arith.constant 0.000000e+00 : f32
    %15 = vector.broadcast %cst_11 : f32 to vector<4x256xf32>
    %16 = arith.maximumf %14, %15 : vector<4x256xf32>
    %17 = arith.truncf %16 : vector<4x256xf32> to vector<4x256xbf16>
    %c0_12 = arith.constant 0 : index
    %c0_13 = arith.constant 0 : index
    %18 = vector.load %arg6[%c0_12, %c0_13] : memref<256x4xbf16, #tpu.memory_space<vmem>>, vector<256x4xbf16>
    %cst_14 = arith.constant dense<0.000000e+00> : vector<4x4xf32>
    %19 = tpu.matmul %17, %18, %cst_14 {dimension_numbers = #tpu.dot_dimension_numbers<[1], [0], [0], [1], [0, 0, 1, 1], [], []>} : vector<4x256xbf16>, vector<256x4xbf16>, vector<4x4xf32> -> vector<4x4xf32>
    %c0_15 = arith.constant 0 : index
    %20 = memref.load %arg7[%c0_15] : memref<1xf32, #tpu.memory_space<smem>>
    %21 = vector.broadcast %20 : f32 to vector<4x4xf32>
    %22 = arith.addf %19, %21 : vector<4x4xf32>
    %c0_16 = arith.constant 0 : index
    %c0_17 = arith.constant 0 : index
    %23 = vector.load %arg8[%c0_16, %c0_17] : memref<4x4xf32, #tpu.memory_space<vmem>>, vector<4x4xf32>
    tpu.vector_store %arg8[%c0_16, %c0_17], %22 {strides = array<i32>} : memref<4x4xf32, #tpu.memory_space<vmem>>, vector<4x4xf32>,
    return
  }
  func.func @transform_0(%arg0: i32) -> (i32, i32) {
    %c0_i32 = arith.constant 0 : i32
    %c0_i32_0 = arith.constant 0 : i32
    return %arg0, %c0_i32 : i32, i32
  }
  func.func @transform_1(%arg0: i32) -> (i32, i32) {
    %c0_i32 = arith.constant 0 : i32
    %c0_i32_0 = arith.constant 0 : i32
    %c0_i32_1 = arith.constant 0 : i32
    return %c0_i32, %c0_i32_0 : i32, i32
  }
  func.func @transform_2(%arg0: i32) -> (i32, i32) {
    %c0_i32 = arith.constant 0 : i32
    %c0_i32_0 = arith.constant 0 : i32
    %c0_i32_1 = arith.constant 0 : i32
    return %c0_i32, %c0_i32_0 : i32, i32
  }
  func.func @transform_3(%arg0: i32) -> (i32, i32) {
    %c0_i32 = arith.constant 0 : i32
    %c0_i32_0 = arith.constant 0 : i32
    %c0_i32_1 = arith.constant 0 : i32
    return %c0_i32, %c0_i32_0 : i32, i32
  }
  func.func @transform_4(%arg0: i32) -> (i32, i32) {
    %c0_i32 = arith.constant 0 : i32
    %c0_i32_0 = arith.constant 0 : i32
    %c0_i32_1 = arith.constant 0 : i32
    return %c0_i32, %c0_i32_0 : i32, i32
  }
  func.func @transform_5(%arg0: i32) -> (i32, i32) {
    %c0_i32 = arith.constant 0 : i32
    %c0_i32_0 = arith.constant 0 : i32
    %c0_i32_1 = arith.constant 0 : i32
    return %c0_i32, %c0_i32_0 : i32, i32
  }
  func.func @transform_6(%arg0: i32) -> i32 {
    %c0_i32 = arith.constant 0 : i32
    %c0_i32_0 = arith.constant 0 : i32
    return %c0_i32 : i32
  }
  func.func @transform_7(%arg0: i32) -> (i32, i32) {
    %c0_i32 = arith.constant 0 : i32
    %c0_i32_0 = arith.constant 0 : i32
    return %arg0, %c0_i32 : i32, i32
  }
}

</mosaic_0001>

<bundles_post_ra>
// kernel: tpu_custom_call.1
= control target key start
LH: loop header
LB: loop body
LE: loop exit
PB: predicated region body
PF: predicated region fallthrough
CT: control target
= control target key end

     0   :  { %13 = vsyncpa [#allocation4], 0  ;;  %s1016_s0 = inlined_call_operand.vmem [shape: f32[4,128], index: 0, kind: input, shape index: {}]   ;;  %s1017_s1 = inlined_call_operand.vmem [shape: bf16[128,256], index: 1, kind: input, shape index: {}]   ;;  %s1018_s2 = inlined_call_operand.vmem [shape: f32[1,256], index: 2, kind: input, shape index: {}]   ;;  %s1019_s3 = inlined_call_operand.hbm [shape: bf16[256,256], index: 3, kind: input, shape index: {}]   ;;  %s1020_s4 = inlined_call_operand.vmem [shape: f32[1,256], index: 4, kind: input, shape index: {}]   ;;  %s1021_s5 = inlined_call_operand.vmem [shape: bf16[256,4], index: 5, kind: input, shape index: {}]   ;;  %s1022_s6 = inlined_call_operand.<no memory space> [shape: f32[1], index: 6, kind: input, shape index: {}]   ;;  %s1023_s7 = inlined_call_operand.hbm [shape: f32[4,4], index: 7, kind: output, shape index: {}]  }
   0x1   :  { %14 = vsyncpa [#allocation5], 0  ;;  %s857_s24 = smov [#allocation3]  }
   0x2   :  { %s26_s25 = sshll.u32 %s857_s24, 4  ;;  %s27_s25 = int_to_ptr.vmem [resolvable:$true] %s26_s25 }
   0x3   :  { %s821_s26 = scalar_lea.vmem %s27_s25, 4096  ;;  %p826_p1 = scmp.lt.s32.totalorder %s27_s25, %s27_s25 }
   0x4   :  { %p822_p0 = scmp.ne.s32.totalorder %s27_s25, %s821_s26  ;;  %p827_p2 = scmp.lt.s32.totalorder %s821_s26, %s821_s26 }
   0x6   :  { %p828_p3 = por %p827_p2, %p826_p1 }
   0x8   :  { %p829_p4 = pnand %p828_p3, %p822_p0 }
   0xa   :  { %832 = shalt.err (!%p829_p4)
}
   0xb   :  { %s858_s27 = smov 128   ;;  %s859_s28 = smov 8  }
   0xc   :  { %32 = dma.hbm_to_vmem [thread:$0]  %s1019_s3, 4096, %s27_s25, [#allocation4], %s858_s27, %s858_s27, %s859_s28  }
   0xd   :  { %853 = dma.done.wait [#allocation4], 4096  }
   0xe   :  { %854 = vsyncadd [#allocation4], 4294963200  ;;  %v860_v0 = vmov 0   ;;  %v725_v1 = vld [vmem:[%s1017_s1 + $0x74] ss:$8 sps:$4 sm:$0xff]   ;;  %v801_v55 = vld [vmem:[%s1021_s5 + $0x68] sm:$0xff]   ;;  %v63_v63 = vlaneseq }
   0xf   :  { %185 = vmatprep.mubr.bf16.mxu0 %v860_v0  ;;  %v727_v2 = vld [vmem:[%s1017_s1 + $0x70] ss:$8 sps:$4 sm:$0xff]   ;;  %153 = vmatprep.subr.bf16.mxu0 %v725_v1  ;;  %v728_v3 = vld [vmem:[%s1017_s1 + $0x64] ss:$8 sps:$4 sm:$0xff]   ;;  %v730_v4 = vld [vmem:[%s1017_s1 + $0x60] ss:$8 sps:$4 sm:$0xff]  }
  0x10   :  { %154 = vmatpush1.bf16.msra.mxu0 %v727_v2  ;;  %v731_v5 = vld [vmem:[%s1017_s1 + $0x54] ss:$8 sps:$4 sm:$0xff]   ;;  %v733_v6 = vld [vmem:[%s1017_s1 + $0x50] ss:$8 sps:$4 sm:$0xff]   ;;  %v734_v7 = vld [vmem:[%s1017_s1 + $0x44] ss:$8 sps:$4 sm:$0xff]  }
  0x11   :  { %155 = vmatprep.subr.bf16.mxu0 %v728_v3  ;;  %v736_v8 = vld [vmem:[%s1017_s1 + $0x40] ss:$8 sps:$4 sm:$0xff]   ;;  %v737_v9 = vld [vmem:[%s1017_s1 + $0x34] ss:$8 sps:$4 sm:$0xff]   ;;  %v751_v11 = vld [vmem:[#allocation3 + $0x70] ss:$8 sps:$4 sm:$0xff]  }
  0x12   :  { %v749_v10 = vld [vmem:[#allocation3 + $0x74] ss:$8 sps:$4 sm:$0xff]   ;;  %v752_v12 = vld [vmem:[#allocation3 + $0x64] ss:$8 sps:$4 sm:$0xff]   ;;  %v739_v13 = vld [vmem:[%s1017_s1 + $0x30] ss:$8 sps:$4 sm:$0xff]  }
  0x13   :  { %402 = vmatprep.subr.bf16.mxu1 %v749_v10  ;;  %v754_v14 = vld [vmem:[#allocation3 + $0x60] ss:$8 sps:$4 sm:$0xff]   ;;  %v755_v15 = vld [vmem:[#allocation3 + $0x54] ss:$8 sps:$4 sm:$0xff]   ;;  %v740_v16 = vld [vmem:[%s1017_s1 + $0x24] ss:$8 sps:$4 sm:$0xff]  }
  0x14   :  { %156 = vmatpush1.bf16.msra.mxu0 %v730_v4  ;;  %403 = vmatpush1.bf16.msra.mxu1 %v751_v11  ;;  %v742_v17 = vld [vmem:[%s1017_s1 + $0x20] ss:$8 sps:$4 sm:$0xff]   ;;  %v757_v18 = vld [vmem:[#allocation3 + $0x50] ss:$8 sps:$4 sm:$0xff]   ;;  %v758_v19 = vld [vmem:[#allocation3 + $0x44] ss:$8 sps:$4 sm:$0xff]  }
  0x15   :  { %157 = vmatprep.subr.bf16.mxu0 %v731_v5  ;;  %404 = vmatprep.subr.bf16.mxu1 %v752_v12  ;;  %v743_v20 = vld [vmem:[%s1017_s1 + $0x14] ss:$8 sps:$4 sm:$0xff]   ;;  %v745_v21 = vld [vmem:[%s1017_s1 + $0x10] ss:$8 sps:$4 sm:$0xff]   ;;  %v760_v22 = vld [vmem:[#allocation3 + $0x40] ss:$8 sps:$4 sm:$0xff]  }
  0x16   :  { %v761_v23 = vld [vmem:[#allocation3 + $0x34] ss:$8 sps:$4 sm:$0xff]   ;;  %v746_v24 = vld [vmem:[%s1017_s1 + $0x4] ss:$8 sps:$4 sm:$0xff]   ;;  %v748_v25 = vld [vmem:[%s1017_s1] ss:$8 sps:$4 sm:$0xff]  }
  0x17   :  { %v43_v26 = vld [vmem:[%s1016_s0] sm:$0xf]  ;;  %v763_v27 = vld [vmem:[#allocation3 + $0x30] ss:$8 sps:$4 sm:$0xff]   ;;  %v764_v28 = vld [vmem:[#allocation3 + $0x24] ss:$8 sps:$4 sm:$0xff]  }
  0x18   :  { %158 = vmatpush1.bf16.msra.mxu0 %v733_v6  ;;  %405 = vmatpush1.bf16.msra.mxu1 %v754_v14  ;;  %v766_v29 = vld [vmem:[#allocation3 + $0x20] ss:$8 sps:$4 sm:$0xff]   ;;  %v767_v30 = vld [vmem:[#allocation3 + $0x14] ss:$8 sps:$4 sm:$0xff]   ;;  %v44_v31 = vpack.c.bf16 %v43_v26, %v43_v26  ;;  %v769_v32 = vld [vmem:[#allocation3 + $0x10] ss:$8 sps:$4 sm:$0xff]  }
  0x19   :  { %159 = vmatprep.subr.bf16.mxu0 %v734_v7  ;;  %406 = vmatprep.subr.bf16.mxu1 %v755_v15  ;;  %v770_v33 = vld [vmem:[#allocation3 + $0x4] ss:$8 sps:$4 sm:$0xff]   ;;  %v772_v34 = vld [vmem:[#allocation3] ss:$8 sps:$4 sm:$0xff]   ;;  %v773_v35 = vld [vmem:[#allocation3 + $0xf4] ss:$8 sps:$4 sm:$0xff]  }
  0x1a   :  { %v775_v36 = vld [vmem:[#allocation3 + $0xf0] ss:$8 sps:$4 sm:$0xff]   ;;  %v776_v37 = vld [vmem:[#allocation3 + $0xe4] ss:$8 sps:$4 sm:$0xff]   ;;  %v778_v38 = vld [vmem:[#allocation3 + $0xe0] ss:$8 sps:$4 sm:$0xff]  }
  0x1b   :  { %v779_v39 = vld [vmem:[#allocation3 + $0xd4] ss:$8 sps:$4 sm:$0xff]   ;;  %v781_v40 = vld [vmem:[#allocation3 + $0xd0] ss:$8 sps:$4 sm:$0xff]   ;;  %v782_v41 = vld [vmem:[#allocation3 + $0xc4] ss:$8 sps:$4 sm:$0xff]  }
  0x1c   :  { %160 = vmatpush1.bf16.msra.mxu0 %v736_v8  ;;  %407 = vmatpush1.bf16.msra.mxu1 %v757_v18  ;;  %v784_v42 = vld [vmem:[#allocation3 + $0xc0] ss:$8 sps:$4 sm:$0xff]   ;;  %v785_v43 = vld [vmem:[#allocation3 + $0xb4] ss:$8 sps:$4 sm:$0xff]   ;;  %v787_v44 = vld [vmem:[#allocation3 + $0xb0] ss:$8 sps:$4 sm:$0xff]  }
  0x1d   :  { %161 = vmatprep.subr.bf16.mxu0 %v737_v9  ;;  %408 = vmatprep.subr.bf16.mxu1 %v758_v19  ;;  %v788_v45 = vld [vmem:[#allocation3 + $0xa4] ss:$8 sps:$4 sm:$0xff]   ;;  %v790_v46 = vld [vmem:[#allocation3 + $0xa0] ss:$8 sps:$4 sm:$0xff]   ;;  %v791_v47 = vld [vmem:[#allocation3 + $0x94] ss:$8 sps:$4 sm:$0xff]  }
  0x1e   :  { %v793_v48 = vld [vmem:[#allocation3 + $0x90] ss:$8 sps:$4 sm:$0xff]   ;;  %v794_v49 = vld [vmem:[#allocation3 + $0x84] ss:$8 sps:$4 sm:$0xff]   ;;  %v796_v50 = vld [vmem:[#allocation3 + $0x80] ss:$8 sps:$4 sm:$0xff]  }
  0x1f   :  { %v797_v51 = vld [vmem:[%s1021_s5 + $0x78] sm:$0xff]   ;;  %v799_v53 = vld [vmem:[%s1021_s5 + $0x70] sm:$0xff]   ;;  %v802_v56 = vld [vmem:[%s1021_s5 + $0x28] sm:$0xff]   ;;  %v64_v0 = vshrl.u32 %v63_v63, 7  ;;  %vm617_vm0 = vcmask 27648  }
  0x20   :  { %162 = vmatpush1.bf16.msra.mxu0 %v739_v13  ;;  %409 = vmatpush1.bf16.msra.mxu1 %v760_v22  ;;  %v798_v52 = vld [vmem:[%s1021_s5 + $0x38] sm:$0xff]   ;;  %v800_v54 = vld [vmem:[%s1021_s5 + $0x30] sm:$0xff]   ;;  %v803_v57 = vld [vmem:[%s1021_s5 + $0x60] sm:$0xff]  }
  0x21   :  { %163 = vmatprep.subr.bf16.mxu0 %v740_v16  ;;  %410 = vmatprep.subr.bf16.mxu1 %v761_v23  ;;  %v804_v58 = vld [vmem:[%s1021_s5 + $0x20] sm:$0xff]   ;;  %v805_v59 = vld [vmem:[%s1021_s5 + $0x58] sm:$0xff]   ;;  %v807_v61 = vld [vmem:[%s1021_s5 + $0x50] sm:$0xff]   ;;  %v65_v1 = vsub.s32 0, %v64_v0  ;;  %v69_v3 = vsub.s32 1, %v64_v0 }
  0x22   :  { %v806_v60 = vld [vmem:[%s1021_s5 + $0x18] sm:$0xff]   ;;  %v808_v62 = vld [vmem:[%s1021_s5 + $0x10] sm:$0xff]   ;;  %v61_v2 = vld [vmem:[%s1018_s2] sm:$0x3] }
  0x23   :  { %v66_v4 = vrot.slane %v61_v2, %v65_v1  ;;  %v70_v5 = vrot.slane %v61_v2, %v69_v3  ;;  %v809_v16 = vld [vmem:[%s1021_s5 + $0x48] sm:$0xff]   ;;  %v811_v18 = vld [vmem:[%s1021_s5 + $0x40] sm:$0xff]  }
  0x24   :  { %164 = vmatpush1.bf16.msra.mxu0 %v742_v17  ;;  %411 = vmatpush1.bf16.msra.mxu1 %v763_v27  ;;  %v810_v17 = vld [vmem:[%s1021_s5 + $0x8] sm:$0xff]   ;;  %v812_v19 = vld [vmem:[%s1021_s5] sm:$0xff]  }
  0x25   :  { %165 = vmatprep.subr.bf16.mxu0 %v743_v20  ;;  %412 = vmatprep.subr.bf16.mxu1 %v764_v28  ;;  %v230_v20 = vld [vmem:[%s1020_s4] sm:$0x3]  ;;  %s861_s4 = smov [#allocation6]  }
  0x26   :  { %v239_v22 = vrot.slane %v230_v20, %v69_v3  ;;  %s625_s25 = sshll.u32 %s861_s4, 4  ;;  %s626_s25 = int_to_ptr.vmem [resolvable:$true] %s625_s25 }
  0x27   :  { %s833_s26 = scalar_lea.vmem %s626_s25, 64  ;;  %p838_p6 = scmp.lt.s32.totalorder %s626_s25, %s626_s25 }
  0x28   :  { %166 = vmatpush1.bf16.msra.mxu0 %v745_v21  ;;  %413 = vmatpush1.bf16.msra.mxu1 %v766_v29  ;;  %v235_v21 = vrot.slane %v230_v20, %v65_v1  ;;  %p834_p5 = scmp.ne.s32.totalorder %s626_s25, %s833_s26  ;;  %p839_p7 = scmp.lt.s32.totalorder %s833_s26, %s833_s26 }
  0x29   :  { %167 = vmatprep.subr.bf16.mxu0 %v746_v24  ;;  %414 = vmatprep.subr.bf16.mxu1 %v767_v30 }
  0x2a   :  { %p840_p8 = por %p839_p7, %p838_p6 }
  0x2c   :  { %168 = vmatpush1.bf16.msra.mxu0 %v748_v25  ;;  %415 = vmatpush1.bf16.msra.mxu1 %v769_v32  ;;  %p841_p9 = pnand %p840_p8, %p834_p5 }
  0x2d   :  { %416 = vmatprep.subr.bf16.mxu1 %v770_v33  ;;  %698 = vmatprep.subr.bf16.mxu0 %v797_v51 }
  0x2f   :  { %186 = vmatmul.mubr.bf16.vlgmr.msra.gmra.mxu0 %v44_v31 }
  0x30   :  { %417 = vmatpush1.bf16.msra.mxu1 %v772_v34  ;;  %699 = vmatpush3.bf16.msra.mxu0 %v798_v52  ;;  %v480_v34 = vstv %s1022_s6 }
  0x31   :  { %418 = vmatprep.subr.bf16.mxu1 %v773_v35  ;;  %700 = vmatprep.subr.bf16.mxu0 %v799_v53 }
  0x34   :  { %419 = vmatpush2.bf16.msra.mxu1 %v775_v36  ;;  %701 = vmatpush3.bf16.msra.mxu0 %v800_v54 }
  0x35   :  { %420 = vmatprep.subr.bf16.mxu1 %v776_v37  ;;  %702 = vmatprep.subr.bf16.mxu0 %v801_v55 }
  0x38   :  { %421 = vmatpush2.bf16.msra.mxu1 %v778_v38  ;;  %703 = vmatpush3.bf16.msra.mxu0 %v802_v56 }
  0x39   :  { %422 = vmatprep.subr.bf16.mxu1 %v779_v39  ;;  %704 = vmatprep.subr.bf16.mxu0 %v803_v57 }
  0x3c   :  { %423 = vmatpush2.bf16.msra.mxu1 %v781_v40  ;;  %705 = vmatpush3.bf16.msra.mxu0 %v804_v58 }
  0x3d   :  { %424 = vmatprep.subr.bf16.mxu1 %v782_v41  ;;  %706 = vmatprep.subr.bf16.mxu0 %v805_v59 }
  0x40   :  { %425 = vmatpush2.bf16.msra.mxu1 %v784_v42  ;;  %707 = vmatpush3.bf16.msra.mxu0 %v806_v60 }
  0x41   :  { %426 = vmatprep.subr.bf16.mxu1 %v785_v43  ;;  %708 = vmatprep.subr.bf16.mxu0 %v807_v61 }
  0x44   :  { %427 = vmatpush2.bf16.msra.mxu1 %v787_v44  ;;  %709 = vmatpush3.bf16.msra.mxu0 %v808_v62 }
  0x45   :  { %428 = vmatprep.subr.bf16.mxu1 %v788_v45  ;;  %710 = vmatprep.subr.bf16.mxu0 %v809_v16 }
  0x48   :  { %429 = vmatpush2.bf16.msra.mxu1 %v790_v46  ;;  %711 = vmatpush3.bf16.msra.mxu0 %v810_v17 }
  0x49   :  { %430 = vmatprep.subr.bf16.mxu1 %v791_v47  ;;  %712 = vmatprep.subr.bf16.mxu0 %v811_v18 }
  0x4c   :  { %431 = vmatpush2.bf16.msra.mxu1 %v793_v48  ;;  %713 = vmatpush3.bf16.msra.mxu0 %v812_v19 }
  0x4d   :  { %432 = vmatprep.subr.bf16.mxu1 %v794_v49 }
  0x50   :  { %433 = vmatpush2.bf16.msra.mxu1 %v796_v50 }
  0xef   :  { %v187_v6 = vpop.f32.mrf.mxu0 }
  0xf0   :  { %v188_v7 = vadd.f32 %v187_v6, %v66_v4 }
  0xf1   :  { %v189_v8 = vpop.f32.mrf.mxu0 }
  0xf2   :  { %v190_v9 = vadd.f32 %v189_v8, %v70_v5  ;;  %v194_v10 = vmax.f32 %v188_v7, 0.0 }
  0xf3   :  { %v191_v11 = vpop.f32.mrf.mxu0 }
  0xf4   :  { %v195_v12 = vmax.f32 %v190_v9, 0.0  ;;  %v196_v15 = vpack.c.bf16 %v194_v10, %v194_v10 }
  0xf5   :  { %v192_v13 = vpop.f32.mrf.mxu0 }
  0xf6   :  { %v197_v14 = vpack.c.bf16 %v195_v12, %v195_v12 }
  0xf8   :  { %434 = vmatprep.mubr.bf16.mxu1 %v197_v14 }
  0xf9   :  { %435 = vmatmul.mubr.bf16.vlgmr.msra.gmra.mxu1 %v196_v15 }
 0x1b9   :  { %v436_v23 = vpop.f32.mrf.mxu1 }
 0x1ba   :  { %v437_v24 = vadd.f32 %v436_v23, %v235_v21 }
 0x1bb   :  { %v438_v25 = vpop.f32.mrf.mxu1 }
 0x1bc   :  { %v439_v26 = vadd.f32 %v438_v25, %v239_v22  ;;  %v443_v27 = vmax.f32 %v437_v24, 0.0 }
 0x1bd   :  { %v440_v28 = vpop.f32.mrf.mxu1 }
 0x1be   :  { %v444_v29 = vmax.f32 %v439_v26, 0.0  ;;  %v445_v32 = vpack.c.bf16 %v443_v27, %v443_v27 }
 0x1bf   :  { %v441_v30 = vpop.f32.mrf.mxu1 }
 0x1c0   :  { %v446_v31 = vpack.c.bf16 %v444_v29, %v444_v29 }
 0x1c2   :  { %609 = vmatprep.mubr.bf16.mxu0 %v446_v31 }
 0x1c3   :  { %610 = vmatmul.mubr.bf16.vlgmr.msra.gmra.mxu0 %v445_v32 }
 0x283   :  { %v714_v33 = vpop.f32.mrf.mxu0 }
 0x285   :  { %v715_v35 = vpop.f32.mrf.mxu0 }
 0x286   :  { %v716_v36 = vadd.f32 %v715_v35, %v714_v33 }
 0x287   :  { %v717_v37 = vpop.f32.mrf.mxu0 }
 0x288   :  { %v612_v38 = vadd.f32 %v716_v36, %v480_v34 }
 0x289   :  { %v718_v39 = vpop.f32.mrf.mxu0 }
 0x28a   :  { %618 = vst.msk [vmem:[#allocation6] sm:$0xf] %vm617_vm0, %v612_v38 }
 0x28b   :  { %844 = shalt.err (!%p841_p9)
}
 0x28c   :  { %628 = dma.vmem_to_hbm [thread:$0]  %s626_s25, 64, %s1023_s7, [#allocation5]  }
 0x28d   :  { %855 = dma.done.wait [#allocation5], 64  }
 0x28e   :  { %856 = vsyncadd [#allocation5], 4294967232 }
 0x28f   :  { %632 = vsyncpa [#allocation4], 1 }
 0x290   :  { %633 = vsyncpa [#allocation5], 1 }

</bundles_post_ra>
